<compile_context>
chip_gen: v7x
topology: tpu7x:2x2x1
jax: 0.10.0
libtpu: 0.0.40
codegen_flags: <defaults>
</compile_context>

<pallas_src>
import functools

import jax
import jax.numpy as jnp
from jax.experimental import pallas as pl
from jax.experimental.pallas import tpu as pltpu


def _round_up(x, m):
    return ((x + m - 1) // m) * m


# ---------------------------------------------------------------------------
# In-kernel helpers
# ---------------------------------------------------------------------------
def _layernorm(h, gamma, beta, eps=1e-5):
    # h: (tm, H) f32, gamma/beta: (1, H) f32  -- matches torch.nn.LayerNorm(H)
    mu = jnp.mean(h, axis=-1, keepdims=True)
    var = jnp.mean((h - mu) ** 2, axis=-1, keepdims=True)
    return (h - mu) * jax.lax.rsqrt(var + eps) * gamma + beta


def amt_mlp_kernel(x_ref,                               # (tm, W)       f32
                   w0_ref, b0_ref, g0_ref, be0_ref,     # (W,H) cdt, (1,H) f32 x3
                   wl_ref, bl_ref, gl_ref, bel_ref,     # (L,H,H) cdt, (L,1,H) f32 x3
                   wh_ref, bh_ref,                      # (H,NLp) cdt, (1,NLp) f32
                   o_ref,                               # (tm, NLp)     f32
                   *, compute_dtype):
    # MXU operands in compute_dtype (bf16 is full rate on v5e/v6e/v7x MXUs);
    # accumulation (preferred_element_type) and all element-wise / LayerNorm
    # math stay in f32.
    x = x_ref[...].astype(compute_dtype)

    # project_raw: Linear -> LayerNorm -> ReLU
    h = jnp.dot(x, w0_ref[...], preferred_element_type=jnp.float32) + b0_ref[...]
    h = jnp.maximum(_layernorm(h, g0_ref[...], be0_ref[...]), 0.0)

    # residual hidden layers: h = h + ReLU(LayerNorm(Linear(h)))
    # n_layers is small & static, so a Python unroll is fine at these sizes;
    # for large n_layers switch to lax.fori_loop(..., unroll=True) over
    # wl_ref[l] so live ranges stay bounded (avoids vreg spills at big tm).
    n_layers = wl_ref.shape[0]
    for l in range(n_layers):
        z = jnp.dot(h.astype(compute_dtype), wl_ref[l],
                    preferred_element_type=jnp.float32) + bl_ref[l]
        z = jnp.maximum(_layernorm(z, gl_ref[l], bel_ref[l]), 0.0)
        h = h + z

    # head into a lane-dense (tm, NLp) slab (NLp = n_labels rounded up to 128
    # => unmasked full-lane stores instead of 5-wide masked partial stores).
    o_ref[...] = (jnp.dot(h.astype(compute_dtype), wh_ref[...],
                          preferred_element_type=jnp.float32)
                  + bh_ref[...]).astype(o_ref.dtype)


# ---------------------------------------------------------------------------
# Wrapper
# ---------------------------------------------------------------------------
def unfold_x(x, window_size):
    """[B, S] -> [B, S, W]: zero-pad + W shifted slices (no gather HLO)."""
    W = window_size
    pad_b = W // 2 - int(W % 2 == 0)
    pad_e = W // 2
    xp = jnp.pad(x, ((0, 0), (pad_b, pad_e)))                        # (B, S+W-1)
    S = x.shape[1]
    return jnp.stack([xp[:, w:w + S] for w in range(W)], axis=-1)    # (B, S, W)


def _pick_tm(R, in_dim, H, out_dim, weight_bytes, *, tm_max=1024,
             vmem_budget_bytes=24 * 1024 * 1024):
    """Row tile: as large as possible, but
       - grid >= 2 whenever R allows (v7x has 2 TensorCores per chip),
       - per-step VMEM footprint under a conservative budget (v7x has only
         64 MiB physical VMEM; tiles are double-buffered by the pipeline)."""
    tm = min(tm_max, _round_up(max(8, pl.cdiv(R, 2)), 8))

    def vmem_est(t):
        lane = 128  # last dim is lane-padded to 128 in VMEM
        tin = 2 * t * _round_up(in_dim, lane) * 4     # double-buffered x tile
        tout = 2 * t * _round_up(out_dim, lane) * 4   # double-buffered out tile
        act = 4 * t * _round_up(H, lane) * 4          # live f32 activation temps
        return tin + tout + act + 2 * weight_bytes    # resident (2x-buffered) weights

    while tm > 8 and vmem_est(tm) > vmem_budget_bytes:
        tm = max(8, _round_up(tm // 2, 8))
    return tm


def amt_mlp_forward(x, params, *, window_size, n_labels,
                    compute_dtype=jnp.bfloat16, tm_max=1024):
    B, S = x.shape
    W = window_size
    H = params["w0"].shape[1]
    L = params["wl"].shape[0]
    NLp = _round_up(max(n_labels, 1), 128)    # lane-dense output slab width

    # --- sliding-window unfold (plain-JAX glue, slice+stack, no gather) ----
    # TODO(synk): dedup the W-fold input read by folding the unfold into the
    # kernel (first Linear as a 1-D conv over the padded signal in a
    # tokens-on-lanes layout); with the 128-lane output slab the input stream
    # is the secondary HBM term, so it is kept host-side for robustness.
    xu = unfold_x(x, W)                       # (B, S, W)
    R = B * S
    xr = xu.reshape(R, W).astype(jnp.float32)

    # --- head padded to a lane-dense 128-multiple --------------------------
    wh, bh = params["wh"], params["bh"]
    whp = jnp.zeros((H, NLp), jnp.float32).at[:, :n_labels].set(wh)
    bhp = jnp.zeros((1, NLp), jnp.float32).at[:, :n_labels].set(bh)

    # --- MXU operands in compute_dtype (f32 accumulate inside the kernel) --
    w0 = params["w0"].astype(compute_dtype)
    wl = params["wl"].astype(compute_dtype)
    whp = whp.astype(compute_dtype)
    b0, g0, be0 = params["b0"], params["g0"], params["be0"]
    bl, gl, bel = params["bl"], params["gl"], params["bel"]

    weights = (w0, b0, g0, be0, wl, bl, gl, bel, whp, bhp)
    weight_bytes = sum(int(a.size) * a.dtype.itemsize for a in weights)

    # --- row tiling: cdiv grid + padding (no divisibility assert) ----------
    tm = _pick_tm(R, W, H, NLp, weight_bytes, tm_max=tm_max)
    n_row_tiles = pl.cdiv(R, tm)
    R_pad = n_row_tiles * tm
    if R_pad != R:
        xr = jnp.pad(xr, ((0, R_pad - R), (0, 0)))

    def full(a):
        rank = len(a.shape)
        return pl.BlockSpec(a.shape, lambda i, _r=rank: (0,) * _r)

    cost = pl.CostEstimate(
        flops=int(2 * R_pad * (W * H + L * H * H + H * NLp)),
        transcendentals=int(R_pad * (L + 1)),              # one rsqrt per LN row
        bytes_accessed=int(R_pad * W * 4 + weight_bytes + R_pad * NLp * 4),
    )

    kernel = functools.partial(amt_mlp_kernel, compute_dtype=compute_dtype)

    out = pl.pallas_call(
        kernel,
        out_shape=jax.ShapeDtypeStruct((R_pad, NLp), jnp.float32),
        grid_spec=pltpu.PrefetchScalarGridSpec(
            num_scalar_prefetch=0,
            grid=(n_row_tiles,),
            in_specs=[pl.BlockSpec((tm, W), lambda i: (i, 0))]
                     + [full(a) for a in weights],
            out_specs=pl.BlockSpec((tm, NLp), lambda i: (i, 0)),
        ),
        compiler_params=pltpu.CompilerParams(
            dimension_semantics=("parallel",),
            vmem_limit_bytes=48 * 1024 * 1024,   # above v5e's 16 MiB default, below v7x's 64 MiB physical
        ),
        cost_estimate=cost,
    )(xr, *weights)

    return out[:R, :n_labels].reshape(B, S, n_labels)


# ---------------------------------------------------------------------------
# Pure-JAX reference (mirrors the PyTorch forward)
# ---------------------------------------------------------------------------
def amt_mlp_reference(x, params, *, window_size):
    xu = unfold_x(x, window_size)

    def ln(h, g, b, eps=1e-5):
        mu = jnp.mean(h, axis=-1, keepdims=True)
        var = jnp.mean((h - mu) ** 2, axis=-1, keepdims=True)
        return (h - mu) / jnp.sqrt(var + eps) * g + b

    h = jnp.maximum(ln(xu @ params["w0"] + params["b0"],
                       params["g0"], params["be0"]), 0.0)
    for l in range(params["wl"].shape[0]):
        z = jnp.maximum(ln(h @ params["wl"][l] + params["bl"][l],
                           params["gl"][l], params["bel"][l]), 0.0)
        h = h + z
    return h @ params["wh"] + params["bh"]


# ---------------------------------------------------------------------------
# Deterministic parameter init (shapes follow the nn.Module __init__)
# ---------------------------------------------------------------------------
def init_params(key, window_size, hidden_size, n_layers, n_labels):
    ks = jax.random.split(key, 6)
    return {
        "w0": 0.2 * jax.random.normal(ks[0], (window_size, hidden_size), jnp.float32),
        "b0": 0.1 * jax.random.normal(ks[1], (1, hidden_size), jnp.float32),
        "g0": jnp.ones((1, hidden_size), jnp.float32),
        "be0": jnp.zeros((1, hidden_size), jnp.float32),
        "wl": 0.2 * jax.random.normal(ks[2], (n_layers, hidden_size, hidden_size), jnp.float32),
        "bl": 0.1 * jax.random.normal(ks[3], (n_layers, 1, hidden_size), jnp.float32),
        "gl": jnp.ones((n_layers, 1, hidden_size), jnp.float32),
        "bel": jnp.zeros((n_layers, 1, hidden_size), jnp.float32),
        "wh": 0.2 * jax.random.normal(ks[4], (hidden_size, n_labels), jnp.float32),
        "bh": 0.1 * jax.random.normal(ks[5], (1, n_labels), jnp.float32),
    }


def _run_and_check(B, S, W, H, L, NL, compute_dtype, atol, rtol):
    key = jax.random.PRNGKey(0)
    kx, kp = jax.random.split(key)
    x = jax.random.normal(kx, (B, S), jnp.float32)
    params = init_params(kp, W, H, L, NL)
    fwd = jax.jit(functools.partial(amt_mlp_forward, window_size=W,
                                    n_labels=NL, compute_dtype=compute_dtype))
    y = jax.block_until_ready(fwd(x, params))
    y_ref = amt_mlp_reference(x, params, window_size=W)
    assert y.shape == (B, S, NL), (y.shape, (B, S, NL))
    assert bool(jnp.all(jnp.isfinite(y)))
    err = float(jnp.max(jnp.abs(y - y_ref)))
    assert jnp.allclose(y, y_ref, atol=atol, rtol=rtol), f"max abs err {err}"
    return y


if __name__ == "__main__":
    # Small shapes consistent with the module:
    #   window_size=8, hidden_size=32, n_layers=2, n_labels=5,
    #   batch_size=2, input_size=16  ->  x: (2, 16), y: (2, 16, 5).
    _run_and_check(2, 16, 8, 32, 2, 5, jnp.float32, atol=1e-4, rtol=1e-4)
    # bf16 MXU operands (f32 accumulate / f32 LayerNorm): looser tolerance.
    _run_and_check(2, 16, 8, 32, 2, 5, jnp.bfloat16, atol=2e-1, rtol=5e-2)
    # Odd window + row count not divisible by the tile (exercises cdiv + pad).
    _run_and_check(3, 100, 9, 32, 3, 7, jnp.float32, atol=1e-4, rtol=1e-4)
    print("KERNEL_OK")
</pallas_src>

<mosaic_0001>
module attributes {stable_mosaic.version = 11 : i64} {
  func.func @amt_mlp_kernel(%arg0: i32, %arg1: memref<16x8xf32, #tpu.memory_space<vmem>>, %arg2: memref<8x32xf32, #tpu.memory_space<vmem>>, %arg3: memref<1x32xf32, #tpu.memory_space<vmem>>, %arg4: memref<1x32xf32, #tpu.memory_space<vmem>>, %arg5: memref<1x32xf32, #tpu.memory_space<vmem>>, %arg6: memref<2x32x32xf32, #tpu.memory_space<vmem>>, %arg7: memref<2x1x32xf32, #tpu.memory_space<vmem>>, %arg8: memref<2x1x32xf32, #tpu.memory_space<vmem>>, %arg9: memref<2x1x32xf32, #tpu.memory_space<vmem>>, %arg10: memref<32x128xf32, #tpu.memory_space<vmem>>, %arg11: memref<1x128xf32, #tpu.memory_space<vmem>>, %arg12: memref<16x128xf32, #tpu.memory_space<vmem>>) attributes {dimension_semantics = [#tpu.dimension_semantics<parallel>], iteration_bounds = array<i64: 2>, scalar_prefetch = 0 : i64, scratch_operands = 0 : i64, tpu.core_type = #tpu.core_type<tc>, window_params = [{transform_indices = @transform_0, window_bounds = array<i64: 16, 8>}, {pipeline_mode = #tpu.pipeline_mode<synchronous>, transform_indices = @transform_1, window_bounds = array<i64: 8, 32>}, {pipeline_mode = #tpu.pipeline_mode<synchronous>, transform_indices = @transform_2, window_bounds = array<i64: 1, 32>}, {pipeline_mode = #tpu.pipeline_mode<synchronous>, transform_indices = @transform_3, window_bounds = array<i64: 1, 32>}, {pipeline_mode = #tpu.pipeline_mode<synchronous>, transform_indices = @transform_4, window_bounds = array<i64: 1, 32>}, {pipeline_mode = #tpu.pipeline_mode<synchronous>, transform_indices = @transform_5, window_bounds = array<i64: 2, 32, 32>}, {pipeline_mode = #tpu.pipeline_mode<synchronous>, transform_indices = @transform_6, window_bounds = array<i64: 2, 1, 32>}, {pipeline_mode = #tpu.pipeline_mode<synchronous>, transform_indices = @transform_7, window_bounds = array<i64: 2, 1, 32>}, {pipeline_mode = #tpu.pipeline_mode<synchronous>, transform_indices = @transform_8, window_bounds = array<i64: 2, 1, 32>}, {pipeline_mode = #tpu.pipeline_mode<synchronous>, transform_indices = @transform_9, window_bounds = array<i64: 32, 128>}, {pipeline_mode = #tpu.pipeline_mode<synchronous>, transform_indices = @transform_10, window_bounds = array<i64: 1, 128>}, {transform_indices = @transform_11, window_bounds = array<i64: 16, 128>}]} {
    %c0 = arith.constant 0 : index
    %c0_0 = arith.constant 0 : index
    %0 = vector.load %arg1[%c0, %c0_0] : memref<16x8xf32, #tpu.memory_space<vmem>>, vector<16x8xf32>
    %c0_1 = arith.constant 0 : index
    %c0_2 = arith.constant 0 : index
    %1 = vector.load %arg2[%c0_1, %c0_2] : memref<8x32xf32, #tpu.memory_space<vmem>>, vector<8x32xf32>
    %cst = arith.constant dense<0.000000e+00> : vector<16x32xf32>
    %2 = tpu.matmul %0, %1, %cst {dimension_numbers = #tpu.dot_dimension_numbers<[1], [0], [0], [1], [0, 0, 1, 1], [], []>} : vector<16x8xf32>, vector<8x32xf32>, vector<16x32xf32> -> vector<16x32xf32>
    %c0_3 = arith.constant 0 : index
    %c0_4 = arith.constant 0 : index
    %3 = vector.load %arg3[%c0_3, %c0_4] : memref<1x32xf32, #tpu.memory_space<vmem>>, vector<1x32xf32>
    %4 = vector.broadcast %3 : vector<1x32xf32> to vector<16x32xf32>
    %5 = arith.addf %2, %4 : vector<16x32xf32>
    %c0_5 = arith.constant 0 : index
    %c0_6 = arith.constant 0 : index
    %6 = vector.load %arg4[%c0_5, %c0_6] : memref<1x32xf32, #tpu.memory_space<vmem>>, vector<1x32xf32>
    %c0_7 = arith.constant 0 : index
    %c0_8 = arith.constant 0 : index
    %7 = vector.load %arg5[%c0_7, %c0_8] : memref<1x32xf32, #tpu.memory_space<vmem>>, vector<1x32xf32>
    %cst_9 = arith.constant dense<0.000000e+00> : vector<16xf32>
    %8 = vector.multi_reduction <add>, %5, %cst_9 [1] : vector<16x32xf32> to vector<16xf32>
    %9 = vector.shape_cast %8 : vector<16xf32> to vector<16x1xf32>
    %cst_10 = arith.constant 3.200000e+01 : f32
    %10 = vector.broadcast %cst_10 : f32 to vector<16x1xf32>
    %11 = arith.divf %9, %10 : vector<16x1xf32>
    %12 = vector.broadcast %11 : vector<16x1xf32> to vector<16x32xf32>
    %13 = arith.subf %5, %12 : vector<16x32xf32>
    %14 = arith.mulf %13, %13 : vector<16x32xf32>
    %cst_11 = arith.constant dense<0.000000e+00> : vector<16xf32>
    %15 = vector.multi_reduction <add>, %14, %cst_11 [1] : vector<16x32xf32> to vector<16xf32>
    %16 = vector.shape_cast %15 : vector<16xf32> to vector<16x1xf32>
    %cst_12 = arith.constant 3.200000e+01 : f32
    %17 = vector.broadcast %cst_12 : f32 to vector<16x1xf32>
    %18 = arith.divf %16, %17 : vector<16x1xf32>
    %19 = vector.broadcast %11 : vector<16x1xf32> to vector<16x32xf32>
    %20 = arith.subf %5, %19 : vector<16x32xf32>
    %cst_13 = arith.constant 9.99999974E-6 : f32
    %21 = vector.broadcast %cst_13 : f32 to vector<16x1xf32>
    %22 = arith.addf %18, %21 : vector<16x1xf32>
    %23 = math.rsqrt %22 : vector<16x1xf32>
    %24 = vector.broadcast %23 : vector<16x1xf32> to vector<16x32xf32>
    %25 = arith.mulf %20, %24 : vector<16x32xf32>
    %26 = vector.broadcast %6 : vector<1x32xf32> to vector<16x32xf32>
    %27 = arith.mulf %25, %26 : vector<16x32xf32>
    %28 = vector.broadcast %7 : vector<1x32xf32> to vector<16x32xf32>
    %29 = arith.addf %27, %28 : vector<16x32xf32>
    %cst_14 = arith.constant 0.000000e+00 : f32
    %30 = vector.broadcast %cst_14 : f32 to vector<16x32xf32>
    %31 = arith.maximumf %29, %30 : vector<16x32xf32>
    %c0_15 = arith.constant 0 : index
    %c0_16 = arith.constant 0 : index
    %c0_17 = arith.constant 0 : index
    %32 = vector.load %arg6[%c0_15, %c0_16, %c0_17] : memref<2x32x32xf32, #tpu.memory_space<vmem>>, vector<1x32x32xf32>
    %33 = vector.shape_cast %32 : vector<1x32x32xf32> to vector<32x32xf32>
    %cst_18 = arith.constant dense<0.000000e+00> : vector<16x32xf32>
    %34 = tpu.matmul %31, %33, %cst_18 {dimension_numbers = #tpu.dot_dimension_numbers<[1], [0], [0], [1], [0, 0, 1, 1], [], []>} : vector<16x32xf32>, vector<32x32xf32>, vector<16x32xf32> -> vector<16x32xf32>
    %c0_19 = arith.constant 0 : index
    %c0_20 = arith.constant 0 : index
    %c0_21 = arith.constant 0 : index
    %35 = vector.load %arg7[%c0_19, %c0_20, %c0_21] : memref<2x1x32xf32, #tpu.memory_space<vmem>>, vector<1x1x32xf32>
    %36 = vector.shape_cast %35 : vector<1x1x32xf32> to vector<1x32xf32>
    %37 = vector.broadcast %36 : vector<1x32xf32> to vector<16x32xf32>
    %38 = arith.addf %34, %37 : vector<16x32xf32>
    %c0_22 = arith.constant 0 : index
    %c0_23 = arith.constant 0 : index
    %c0_24 = arith.constant 0 : index
    %39 = vector.load %arg8[%c0_22, %c0_23, %c0_24] : memref<2x1x32xf32, #tpu.memory_space<vmem>>, vector<1x1x32xf32>
    %40 = vector.shape_cast %39 : vector<1x1x32xf32> to vector<1x32xf32>
    %c0_25 = arith.constant 0 : index
    %c0_26 = arith.constant 0 : index
    %c0_27 = arith.constant 0 : index
    %41 = vector.load %arg9[%c0_25, %c0_26, %c0_27] : memref<2x1x32xf32, #tpu.memory_space<vmem>>, vector<1x1x32xf32>
    %42 = vector.shape_cast %41 : vector<1x1x32xf32> to vector<1x32xf32>
    %cst_28 = arith.constant dense<0.000000e+00> : vector<16xf32>
    %43 = vector.multi_reduction <add>, %38, %cst_28 [1] : vector<16x32xf32> to vector<16xf32>
    %44 = vector.shape_cast %43 : vector<16xf32> to vector<16x1xf32>
    %cst_29 = arith.constant 3.200000e+01 : f32
    %45 = vector.broadcast %cst_29 : f32 to vector<16x1xf32>
    %46 = arith.divf %44, %45 : vector<16x1xf32>
    %47 = vector.broadcast %46 : vector<16x1xf32> to vector<16x32xf32>
    %48 = arith.subf %38, %47 : vector<16x32xf32>
    %49 = arith.mulf %48, %48 : vector<16x32xf32>
    %cst_30 = arith.constant dense<0.000000e+00> : vector<16xf32>
    %50 = vector.multi_reduction <add>, %49, %cst_30 [1] : vector<16x32xf32> to vector<16xf32>
    %51 = vector.shape_cast %50 : vector<16xf32> to vector<16x1xf32>
    %cst_31 = arith.constant 3.200000e+01 : f32
    %52 = vector.broadcast %cst_31 : f32 to vector<16x1xf32>
    %53 = arith.divf %51, %52 : vector<16x1xf32>
    %54 = vector.broadcast %46 : vector<16x1xf32> to vector<16x32xf32>
    %55 = arith.subf %38, %54 : vector<16x32xf32>
    %cst_32 = arith.constant 9.99999974E-6 : f32
    %56 = vector.broadcast %cst_32 : f32 to vector<16x1xf32>
    %57 = arith.addf %53, %56 : vector<16x1xf32>
    %58 = math.rsqrt %57 : vector<16x1xf32>
    %59 = vector.broadcast %58 : vector<16x1xf32> to vector<16x32xf32>
    %60 = arith.mulf %55, %59 : vector<16x32xf32>
    %61 = vector.broadcast %40 : vector<1x32xf32> to vector<16x32xf32>
    %62 = arith.mulf %60, %61 : vector<16x32xf32>
    %63 = vector.broadcast %42 : vector<1x32xf32> to vector<16x32xf32>
    %64 = arith.addf %62, %63 : vector<16x32xf32>
    %cst_33 = arith.constant 0.000000e+00 : f32
    %65 = vector.broadcast %cst_33 : f32 to vector<16x32xf32>
    %66 = arith.maximumf %64, %65 : vector<16x32xf32>
    %67 = arith.addf %31, %66 : vector<16x32xf32>
    %c1 = arith.constant 1 : index
    %c0_34 = arith.constant 0 : index
    %c0_35 = arith.constant 0 : index
    %68 = vector.load %arg6[%c1, %c0_34, %c0_35] : memref<2x32x32xf32, #tpu.memory_space<vmem>>, vector<1x32x32xf32>
    %69 = vector.shape_cast %68 : vector<1x32x32xf32> to vector<32x32xf32>
    %cst_36 = arith.constant dense<0.000000e+00> : vector<16x32xf32>
    %70 = tpu.matmul %67, %69, %cst_36 {dimension_numbers = #tpu.dot_dimension_numbers<[1], [0], [0], [1], [0, 0, 1, 1], [], []>} : vector<16x32xf32>, vector<32x32xf32>, vector<16x32xf32> -> vector<16x32xf32>
    %c1_37 = arith.constant 1 : index
    %c0_38 = arith.constant 0 : index
    %c0_39 = arith.constant 0 : index
    %71 = vector.load %arg7[%c1_37, %c0_38, %c0_39] : memref<2x1x32xf32, #tpu.memory_space<vmem>>, vector<1x1x32xf32>
    %72 = vector.shape_cast %71 : vector<1x1x32xf32> to vector<1x32xf32>
    %73 = vector.broadcast %72 : vector<1x32xf32> to vector<16x32xf32>
    %74 = arith.addf %70, %73 : vector<16x32xf32>
    %c1_40 = arith.constant 1 : index
    %c0_41 = arith.constant 0 : index
    %c0_42 = arith.constant 0 : index
    %75 = vector.load %arg8[%c1_40, %c0_41, %c0_42] : memref<2x1x32xf32, #tpu.memory_space<vmem>>, vector<1x1x32xf32>
    %76 = vector.shape_cast %75 : vector<1x1x32xf32> to vector<1x32xf32>
    %c1_43 = arith.constant 1 : index
    %c0_44 = arith.constant 0 : index
    %c0_45 = arith.constant 0 : index
    %77 = vector.load %arg9[%c1_43, %c0_44, %c0_45] : memref<2x1x32xf32, #tpu.memory_space<vmem>>, vector<1x1x32xf32>
    %78 = vector.shape_cast %77 : vector<1x1x32xf32> to vector<1x32xf32>
    %cst_46 = arith.constant dense<0.000000e+00> : vector<16xf32>
    %79 = vector.multi_reduction <add>, %74, %cst_46 [1] : vector<16x32xf32> to vector<16xf32>
    %80 = vector.shape_cast %79 : vector<16xf32> to vector<16x1xf32>
    %cst_47 = arith.constant 3.200000e+01 : f32
    %81 = vector.broadcast %cst_47 : f32 to vector<16x1xf32>
    %82 = arith.divf %80, %81 : vector<16x1xf32>
    %83 = vector.broadcast %82 : vector<16x1xf32> to vector<16x32xf32>
    %84 = arith.subf %74, %83 : vector<16x32xf32>
    %85 = arith.mulf %84, %84 : vector<16x32xf32>
    %cst_48 = arith.constant dense<0.000000e+00> : vector<16xf32>
    %86 = vector.multi_reduction <add>, %85, %cst_48 [1] : vector<16x32xf32> to vector<16xf32>
    %87 = vector.shape_cast %86 : vector<16xf32> to vector<16x1xf32>
    %cst_49 = arith.constant 3.200000e+01 : f32
    %88 = vector.broadcast %cst_49 : f32 to vector<16x1xf32>
    %89 = arith.divf %87, %88 : vector<16x1xf32>
    %90 = vector.broadcast %82 : vector<16x1xf32> to vector<16x32xf32>
    %91 = arith.subf %74, %90 : vector<16x32xf32>
    %cst_50 = arith.constant 9.99999974E-6 : f32
    %92 = vector.broadcast %cst_50 : f32 to vector<16x1xf32>
    %93 = arith.addf %89, %92 : vector<16x1xf32>
    %94 = math.rsqrt %93 : vector<16x1xf32>
    %95 = vector.broadcast %94 : vector<16x1xf32> to vector<16x32xf32>
    %96 = arith.mulf %91, %95 : vector<16x32xf32>
    %97 = vector.broadcast %76 : vector<1x32xf32> to vector<16x32xf32>
    %98 = arith.mulf %96, %97 : vector<16x32xf32>
    %99 = vector.broadcast %78 : vector<1x32xf32> to vector<16x32xf32>
    %100 = arith.addf %98, %99 : vector<16x32xf32>
    %cst_51 = arith.constant 0.000000e+00 : f32
    %101 = vector.broadcast %cst_51 : f32 to vector<16x32xf32>
    %102 = arith.maximumf %100, %101 : vector<16x32xf32>
    %103 = arith.addf %67, %102 : vector<16x32xf32>
    %c0_52 = arith.constant 0 : index
    %c0_53 = arith.constant 0 : index
    %104 = vector.load %arg10[%c0_52, %c0_53] : memref<32x128xf32, #tpu.memory_space<vmem>>, vector<32x128xf32>
    %cst_54 = arith.constant dense<0.000000e+00> : vector<16x128xf32>
    %105 = tpu.matmul %103, %104, %cst_54 {dimension_numbers = #tpu.dot_dimension_numbers<[1], [0], [0], [1], [0, 0, 1, 1], [], []>} : vector<16x32xf32>, vector<32x128xf32>, vector<16x128xf32> -> vector<16x128xf32>
    %c0_55 = arith.constant 0 : index
    %c0_56 = arith.constant 0 : index
    %106 = vector.load %arg11[%c0_55, %c0_56] : memref<1x128xf32, #tpu.memory_space<vmem>>, vector<1x128xf32>
    %107 = vector.broadcast %106 : vector<1x128xf32> to vector<16x128xf32>
    %108 = arith.addf %105, %107 : vector<16x128xf32>
    %c0_57 = arith.constant 0 : index
    %c0_58 = arith.constant 0 : index
    %109 = vector.load %arg12[%c0_57, %c0_58] : memref<16x128xf32, #tpu.memory_space<vmem>>, vector<16x128xf32>
    tpu.vector_store %arg12[%c0_57, %c0_58], %108 {strides = array<i32>} : memref<16x128xf32, #tpu.memory_space<vmem>>, vector<16x128xf32>,
    return
  }
  func.func @transform_0(%arg0: i32) -> (i32, i32) {
    %c0_i32 = arith.constant 0 : i32
    %c0_i32_0 = arith.constant 0 : i32
    return %arg0, %c0_i32 : i32, i32
  }
  func.func @transform_1(%arg0: i32) -> (i32, i32) {
    %c0_i32 = arith.constant 0 : i32
    %c0_i32_0 = arith.constant 0 : i32
    %c0_i32_1 = arith.constant 0 : i32
    return %c0_i32, %c0_i32_0 : i32, i32
  }
  func.func @transform_2(%arg0: i32) -> (i32, i32) {
    %c0_i32 = arith.constant 0 : i32
    %c0_i32_0 = arith.constant 0 : i32
    %c0_i32_1 = arith.constant 0 : i32
    return %c0_i32, %c0_i32_0 : i32, i32
  }
  func.func @transform_3(%arg0: i32) -> (i32, i32) {
    %c0_i32 = arith.constant 0 : i32
    %c0_i32_0 = arith.constant 0 : i32
    %c0_i32_1 = arith.constant 0 : i32
    return %c0_i32, %c0_i32_0 : i32, i32
  }
  func.func @transform_4(%arg0: i32) -> (i32, i32) {
    %c0_i32 = arith.constant 0 : i32
    %c0_i32_0 = arith.constant 0 : i32
    %c0_i32_1 = arith.constant 0 : i32
    return %c0_i32, %c0_i32_0 : i32, i32
  }
  func.func @transform_5(%arg0: i32) -> (i32, i32, i32) {
    %c0_i32 = arith.constant 0 : i32
    %c0_i32_0 = arith.constant 0 : i32
    %c0_i32_1 = arith.constant 0 : i32
    %c0_i32_2 = arith.constant 0 : i32
    return %c0_i32, %c0_i32_0, %c0_i32_1 : i32, i32, i32
  }
  func.func @transform_6(%arg0: i32) -> (i32, i32, i32) {
    %c0_i32 = arith.constant 0 : i32
    %c0_i32_0 = arith.constant 0 : i32
    %c0_i32_1 = arith.constant 0 : i32
    %c0_i32_2 = arith.constant 0 : i32
    return %c0_i32, %c0_i32_0, %c0_i32_1 : i32, i32, i32
  }
  func.func @transform_7(%arg0: i32) -> (i32, i32, i32) {
    %c0_i32 = arith.constant 0 : i32
    %c0_i32_0 = arith.constant 0 : i32
    %c0_i32_1 = arith.constant 0 : i32
    %c0_i32_2 = arith.constant 0 : i32
    return %c0_i32, %c0_i32_0, %c0_i32_1 : i32, i32, i32
  }
  func.func @transform_8(%arg0: i32) -> (i32, i32, i32) {
    %c0_i32 = arith.constant 0 : i32
    %c0_i32_0 = arith.constant 0 : i32
    %c0_i32_1 = arith.constant 0 : i32
    %c0_i32_2 = arith.constant 0 : i32
    return %c0_i32, %c0_i32_0, %c0_i32_1 : i32, i32, i32
  }
  func.func @transform_9(%arg0: i32) -> (i32, i32) {
    %c0_i32 = arith.constant 0 : i32
    %c0_i32_0 = arith.constant 0 : i32
    %c0_i32_1 = arith.constant 0 : i32
    return %c0_i32, %c0_i32_0 : i32, i32
  }
  func.func @transform_10(%arg0: i32) -> (i32, i32) {
    %c0_i32 = arith.constant 0 : i32
    %c0_i32_0 = arith.constant 0 : i32
    %c0_i32_1 = arith.constant 0 : i32
    return %c0_i32, %c0_i32_0 : i32, i32
  }
  func.func @transform_11(%arg0: i32) -> (i32, i32) {
    %c0_i32 = arith.constant 0 : i32
    %c0_i32_0 = arith.constant 0 : i32
    return %arg0, %c0_i32 : i32, i32
  }
}

</mosaic_0001>

<bundles_post_ra>
// kernel: amt_mlp_forward.1
= control target key start
LH: loop header
LB: loop body
LE: loop exit
PB: predicated region body
PF: predicated region fallthrough
CT: control target
= control target key end

     0   :  { %s1171_s17 = smov 0   ;;  %s1282_s0 = inlined_call_operand.vmem [shape: f32[32,8], index: 0, kind: input, shape index: {}]   ;;  %s1283_s1 = inlined_call_operand.vmem [shape: f32[8,32], index: 1, kind: input, shape index: {}]   ;;  %s1284_s2 = inlined_call_operand.vmem [shape: f32[1,32], index: 2, kind: input, shape index: {}]   ;;  %s1285_s3 = inlined_call_operand.vmem [shape: f32[1,32], index: 3, kind: input, shape index: {}]   ;;  %s1286_s4 = inlined_call_operand.vmem [shape: f32[1,32], index: 4, kind: input, shape index: {}]   ;;  %s1287_s5 = inlined_call_operand.vmem [shape: f32[2,32,32], index: 5, kind: input, shape index: {}]   ;;  %s1288_s6 = inlined_call_operand.vmem [shape: f32[2,1,32], index: 6, kind: input, shape index: {}]   ;;  %s1289_s7 = inlined_call_operand.vmem [shape: f32[2,1,32], index: 7, kind: input, shape index: {}]   ;;  %s1290_s8 = inlined_call_operand.vmem [shape: f32[2,1,32], index: 8, kind: input, shape index: {}]   ;;  %s1291_s9 = inlined_call_operand.vmem [shape: f32[32,128], index: 9, kind: input, shape index: {}]   ;;  %s1292_s10 = inlined_call_operand.vmem [shape: f32[1,128], index: 10, kind: input, shape index: {}]   ;;  %s1293_s11 = inlined_call_operand.vmem [shape: f32[32,128], index: 11, kind: output, shape index: {}]  }
   0x1 LB: > { %s964_s18 = sadd.s32 4294967295, %s1109_s17   ;;  %p968_p0 = scmp.ge.s32.totalorder %s1109_s17, 1  ;;  %s1109_s17 = sphi %s1171_s17, %s21_s17  }
   0x2   : > { %p338_p1 = scmp.lt.s32.totalorder %s1109_s17, 3 }
   0x4   : > { %p339_p2 = pnand %p968_p0, %p338_p1 }
   0x5   : > { %v392_v0 = vld [vmem:[%s1283_s1] sm:$0xff] (!%p339_p2)  ;;  %s969_s21 = sshll.u32 (!%p339_p2), %s964_s18, 1  ;;  %vm400_vm0 = vcmask (!%p339_p2), 64512   ;;  %vm484_vm1 = vcmask (!%p339_p2), 261120   ;;  %v531_v21 = vld [vmem:[%s1287_s5 + $0x8] sm:$0xff] (!%p339_p2)  ;;  %v532_v22 = vld [vmem:[%s1287_s5 + $0x10] sm:$0xff] (!%p339_p2) }
   0x6   : > { %342 = sbr.rel (%p339_p2) target bundleno = 1834 (0x72a), region = 64  ;;  %1021 = vmatprep.subr.mxu0 (!%p339_p2), %v392_v0  ;;  %p379_p3 = scmp.lt.s32.totalorder (!%p339_p2), %s969_s21, 3  ;;  %v973_v3 = vld [vmem:[%s1284_s2] ss:$0 sm:$0xff] (!%p339_p2)  ;;  %v533_v24 = vld [vmem:[%s1287_s5 + $0x18] sm:$0xff] (!%p339_p2)  ;;  %v984_v62 = vld [vmem:[%s1287_s5 + $0x28] sm:$0xff] (!%p339_p2) }
   0x7   : > { %1022 = vmatpush3.msra.mxu0 (!%p339_p2), %v392_v0  ;;  %v530_v20 = vld [vmem:[%s1287_s5] sm:$0xff] (!%p339_p2)  ;;  %v1063_v25 = vpack.c.bf16 (!%p339_p2), %v533_v24, %v532_v22  ;;  %v985_v63 = vld [vmem:[%s1287_s5 + $0x30] sm:$0xff] (!%p339_p2) }
   0x8   : > { %v1059_v23 = vpack.c.bf16 (!%p339_p2), %v531_v21, %v530_v20  ;;  %v976_v33 = vld [vmem:[%s1285_s3] ss:$0 sm:$0xff] (!%p339_p2) }
   0x9   : > { %v977_v35 = vld [vmem:[%s1286_s4] ss:$0 sm:$0xff] (!%p339_p2) }
   0xa   : > { %1060 = vmatprep.subr.bf16.mxu1 (!%p339_p2), %v1059_v23  ;;  %v978_v44 = vld [vmem:[%s1288_s6] ss:$0 sm:$0xff] (!%p339_p2) }
   0xb   : > { %1062 = vmatpush3.bf16.msra.mxu1 (!%p339_p2), %v1059_v23  ;;  %v983_v61 = vld [vmem:[%s1287_s5 + $0x20] sm:$0xff] (!%p339_p2) }
   0xc   : > { %1064 = vmatprep.subr.bf16.mxu1 (!%p339_p2), %v1063_v25  ;;  %v1067_v0 = vpack.c.bf16 (!%p339_p2), %v984_v62, %v983_v61  ;;  %v988_v23 = vld [vmem:[%s1288_s6 + $0x1] ss:$0 sm:$0xff] (!%p339_p2) }
   0xd   : > { %s1295_s21 = smov (!%p379_p3, %s969_s21), 3 }
   0xe   : > { %s970_s22 = sshll.u32 %s1295_s21, 3  ;;  %1068 = vmatprep.subr.bf16.mxu0 %v1067_v0 }
   0xf   : > { %s382_s25 = scalar_lea.vmem %s1282_s0, %s970_s22  ;;  %1066 = vmatpush3.bf16.msra.mxu1 %v1063_v25  ;;  %s388_s24 = scalar_lea.vmem %s1293_s11, %s970_s22 }
  0x10   : > { %v390_v1 = vld [vmem:[%s382_s25] sm:$0xff]  ;;  %v391_v2 = vld [vmem:[%s382_s25 + $0x8] sm:$0xff] }
  0x11   : > { %1023 = vmatprep.mubr.msk.f32.mxu0 %vm400_vm0, %v390_v1  ;;  %v986_v1 = vld [vmem:[%s1287_s5 + $0x38] sm:$0xff] }
  0x12   : > { %1024 = vmatmul.mubr.msk.f32.vlgmr.msra.gmra.mrb[0].mxu0 %vm400_vm0, %v391_v2  ;;  %v1071_v2 = vpack.c.bf16 %v986_v1, %v985_v63 }
  0x13   : > { %1070 = vmatpush3.bf16.msra.mxu0 %v1067_v0 }
  0x14   : > { %1072 = vmatprep.subr.bf16.mxu0 %v1071_v2 }
  0x17   : > { %1074 = vmatpush3.bf16.msra.mxu0 %v1071_v2  ;;  %v995_v2 = vld [vmem:[%s1292_s10] ss:$0 sm:$0xff] }
  0xe5   : > { %v1025_v4 = vpop.f32.mrb[0].mxu0 }
  0xe6   : > { %v473_v5 = vpop.f32.mrb[1].mxu0  ;;  %v479_v7 = vadd.f32 %v1025_v4, %v973_v3 }
  0xe7   : > { %v474_v6 = vadd.f32 %v973_v3, %v473_v5 }
  0xe8   : > { %v488_v9 = vsel %vm484_vm1, %v479_v7, 0.0 }
  0xe9   : > { %v485_v8 = vsel %vm484_vm1, %v474_v6, 0.0 }
  0xea   : > { %486 = vadd.xlane.f32.xlu0 %v485_v8 }
  0xee   : > { %489 = vadd.xlane.f32.xlu0 %v488_v9 }
 0x177   : > { %v487_v10 = vpop.xlane.xlu0 %486 }
 0x178   : > { %v492_v11 = vmul.f32 0.03125, %v487_v10  ;;  %v981_v10 = vld [vmem:[%s1289_s7] ss:$0 sm:$0xff] }
 0x17a   : > { %v494_v12 = vsub.f32 %v474_v6, %v492_v11 }
 0x17b   : > { %v490_v13 = vpop.xlane.xlu0 %489 }
 0x17c   : > { %v493_v14 = vmul.f32 0.03125, %v490_v13  ;;  %v496_v15 = vmul.f32 %v494_v12, %v494_v12 }
 0x17e   : > { %v495_v16 = vsub.f32 %v479_v7, %v493_v14  ;;  %v498_v17 = vsel %vm484_vm1, %v496_v15, 0.0  ;;  %v982_v14 = vld [vmem:[%s1290_s8] ss:$0 sm:$0xff] }
 0x17f   : > { %499 = vadd.xlane.f32.xlu1 %v498_v17 }
 0x180   : > { %v497_v18 = vmul.f32 %v495_v16, %v495_v16 }
 0x182   : > { %v501_v19 = vsel %vm484_vm1, %v497_v18, 0.0 }
 0x183   : > { %502 = vadd.xlane.f32.xlu1 %v501_v19 }
 0x20c   : > { %v500_v26 = vpop.xlane.xlu1 %499 }
 0x20d   : > { %v504_v27 = vmul.f32 0.03125, %v500_v26 }
 0x20f   : > { %v506_v28 = vadd.f32 1e-05, %v504_v27 }
 0x210   : > { %v503_v29 = vpop.xlane.xlu1 %502 }
 0x211   : > { %1091 = vrsqrt.f32 %v506_v28  ;;  %v505_v30 = vmul.f32 0.03125, %v503_v29 }
 0x213   : > { %v507_v31 = vadd.f32 1e-05, %v505_v30 }
 0x215   : > { %1093 = vrsqrt.f32 %v507_v31 }
 0x21b   : > { %v1092_v32 = vpop.eup %1091 }
 0x21c   : > { %v510_v34 = vmul.f32 %v1092_v32, %v494_v12 }
 0x21e   : > { %v518_v36 = vmul.f32 %v976_v33, %v510_v34 }
 0x21f   : > { %v1094_v37 = vpop.eup %1093 }
 0x220   : > { %v511_v38 = vmul.f32 %v1094_v37, %v495_v16  ;;  %v526_v39 = vadd.f32 %v977_v35, %v518_v36 }
 0x222   : > { %v519_v40 = vmul.f32 %v976_v33, %v511_v38  ;;  %v528_v41 = vmax.f32 %v526_v39, 0.0 }
 0x224   : > { %v527_v42 = vadd.f32 %v977_v35, %v519_v40  ;;  %1034 = vmatprep.mubr.msk.f32.mxu1 %vm484_vm1, %v528_v41  ;;  %v814_v40 = vld [vmem:[%s1291_s9] sm:$0xff] }
 0x226   : > { %v529_v43 = vmax.f32 %v527_v42, 0.0  ;;  %v816_v42 = vld [vmem:[%s1291_s9 + $0x10] sm:$0xff] }
 0x228   : > { %1035 = vmatmul.mubr.msk.f32.vlgmr.msra.gmra.mrb[0].mxu1 %vm484_vm1, %v529_v43 }
 0x2fb   : > { %v1036_v45 = vpop.f32.mrb[0].mxu1 }
 0x2fc   : > { %v619_v46 = vadd.f32 %v1036_v45, %v978_v44  ;;  %v613_v47 = vpop.f32.mrb[1].mxu1 }
 0x2fd   : > { %v614_v48 = vadd.f32 %v978_v44, %v613_v47  ;;  %v817_v44 = vld [vmem:[%s1291_s9 + $0x18] sm:$0xff] }
 0x2fe   : > { %v627_v49 = vsel %vm484_vm1, %v619_v46, 0.0  ;;  %v1079_v45 = vpack.c.bf16 %v817_v44, %v816_v42 }
 0x2ff   : > { %628 = vadd.xlane.f32.xlu1 %v627_v49  ;;  %v624_v50 = vsel %vm484_vm1, %v614_v48, 0.0 }
 0x300   : > { %625 = vadd.xlane.f32.xlu0 %v624_v50 }
 0x38c   : > { %v629_v51 = vpop.xlane.xlu1 %628 }
 0x38d   : > { %v631_v52 = vmul.f32 0.03125, %v629_v51  ;;  %v626_v53 = vpop.xlane.xlu0 %625 }
 0x38e   : > { %v630_v54 = vmul.f32 0.03125, %v626_v53  ;;  %v993_v53 = vld [vmem:[%s1289_s7 + $0x1] ss:$0 sm:$0xff] }
 0x38f   : > { %v633_v55 = vsub.f32 %v619_v46, %v631_v52 }
 0x390   : > { %v632_v56 = vsub.f32 %v614_v48, %v630_v54 }
 0x391   : > { %v635_v57 = vmul.f32 %v633_v55, %v633_v55 }
 0x392   : > { %v634_v58 = vmul.f32 %v632_v56, %v632_v56 }
 0x393   : > { %v639_v59 = vsel %vm484_vm1, %v635_v57, 0.0  ;;  %v994_v57 = vld [vmem:[%s1290_s8 + $0x1] ss:$0 sm:$0xff] }
 0x394   : > { %640 = vadd.xlane.f32.xlu1 %v639_v59  ;;  %v636_v60 = vsel %vm484_vm1, %v634_v58, 0.0 }
 0x395   : > { %637 = vadd.xlane.f32.xlu0 %v636_v60 }
 0x421   : > { %v641_v3 = vpop.xlane.xlu1 %640 }
 0x422   : > { %v643_v4 = vmul.f32 0.03125, %v641_v3  ;;  %v638_v5 = vpop.xlane.xlu0 %637 }
 0x423   : > { %v642_v6 = vmul.f32 0.03125, %v638_v5 }
 0x424   : > { %v645_v7 = vadd.f32 1e-05, %v643_v4 }
 0x425   : > { %v644_v8 = vadd.f32 1e-05, %v642_v6 }
 0x426   : > { %1095 = vrsqrt.f32 %v645_v7 }
 0x427   : > { %1097 = vrsqrt.f32 %v644_v8 }
 0x430   : > { %v1096_v9 = vpop.eup %1095 }
 0x431   : > { %v1098_v11 = vpop.eup %1097  ;;  %v649_v12 = vmul.f32 %v1096_v9, %v633_v55 }
 0x432   : > { %v648_v13 = vmul.f32 %v1098_v11, %v632_v56 }
 0x433   : > { %v657_v15 = vmul.f32 %v981_v10, %v649_v12 }
 0x434   : > { %v656_v16 = vmul.f32 %v981_v10, %v648_v13 }
 0x435   : > { %v665_v17 = vadd.f32 %v982_v14, %v657_v15 }
 0x436   : > { %v664_v18 = vadd.f32 %v982_v14, %v656_v16 }
 0x437   : > { %v667_v19 = vmax.f32 %v665_v17, 0.0 }
 0x438   : > { %v666_v20 = vmax.f32 %v664_v18, 0.0 }
 0x439   : > { %v669_v22 = vadd.f32 %v667_v19, %v529_v43 }
 0x43a   : > { %v668_v21 = vadd.f32 %v666_v20, %v528_v41  ;;  %v815_v41 = vld [vmem:[%s1291_s9 + $0x8] sm:$0xff] }
 0x43b   : > { %v1075_v43 = vpack.c.bf16 %v815_v41, %v814_v40 }
 0x43c   : > { %1045 = vmatprep.mubr.msk.f32.mxu0 %vm484_vm1, %v668_v21 }
 0x43d   : > { %1046 = vmatmul.mubr.msk.f32.vlgmr.msra.gmra.mrb[2].mxu0 %vm484_vm1, %v669_v22  ;;  %1076 = vmatprep.subr.bf16.mxu1 %v1075_v43 }
 0x43e   : > { %1078 = vmatpush3.bf16.msra.mxu1 %v1075_v43 }
 0x43f   : > { %1080 = vmatprep.subr.bf16.mxu1 %v1079_v45 }
 0x442   : > { %1082 = vmatpush3.bf16.msra.mxu1 %v1079_v45 }
 0x510   : > { %v1047_v24 = vpop.f32.mrb[2].mxu0 }
 0x511   : > { %v761_v25 = vadd.f32 %v1047_v24, %v988_v23  ;;  %v755_v26 = vpop.f32.mrb[3].mxu0 }
 0x512   : > { %v756_v27 = vadd.f32 %v988_v23, %v755_v26 }
 0x513   : > { %v771_v28 = vsel %vm484_vm1, %v761_v25, 0.0 }
 0x514   : > { %772 = vadd.xlane.f32.xlu1 %v771_v28  ;;  %v768_v29 = vsel %vm484_vm1, %v756_v27, 0.0 }
 0x515   : > { %769 = vadd.xlane.f32.xlu0 %v768_v29 }
 0x5a1   : > { %v773_v30 = vpop.xlane.xlu1 %772 }
 0x5a2   : > { %v775_v31 = vmul.f32 0.03125, %v773_v30  ;;  %v770_v32 = vpop.xlane.xlu0 %769 }
 0x5a3   : > { %v774_v33 = vmul.f32 0.03125, %v770_v32 }
 0x5a4   : > { %v777_v34 = vsub.f32 %v761_v25, %v775_v31 }
 0x5a5   : > { %v776_v35 = vsub.f32 %v756_v27, %v774_v33 }
 0x5a6   : > { %v779_v36 = vmul.f32 %v777_v34, %v777_v34 }
 0x5a7   : > { %v778_v37 = vmul.f32 %v776_v35, %v776_v35 }
 0x5a8   : > { %v783_v38 = vsel %vm484_vm1, %v779_v36, 0.0 }
 0x5a9   : > { %784 = vadd.xlane.f32.xlu1 %v783_v38  ;;  %v780_v39 = vsel %vm484_vm1, %v778_v37, 0.0 }
 0x5aa   : > { %781 = vadd.xlane.f32.xlu0 %v780_v39 }
 0x636   : > { %v785_v46 = vpop.xlane.xlu1 %784 }
 0x637   : > { %v787_v47 = vmul.f32 0.03125, %v785_v46  ;;  %v782_v48 = vpop.xlane.xlu0 %781 }
 0x638   : > { %v786_v49 = vmul.f32 0.03125, %v782_v48 }
 0x639   : > { %v789_v50 = vadd.f32 1e-05, %v787_v47 }
 0x63a   : > { %v788_v51 = vadd.f32 1e-05, %v786_v49 }
 0x63b   : > { %1099 = vrsqrt.f32 %v789_v50 }
 0x63c   : > { %1101 = vrsqrt.f32 %v788_v51 }
 0x645   : > { %v1100_v52 = vpop.eup %1099 }
 0x646   : > { %v1102_v54 = vpop.eup %1101  ;;  %v793_v55 = vmul.f32 %v1100_v52, %v777_v34 }
 0x647   : > { %v792_v56 = vmul.f32 %v1102_v54, %v776_v35 }
 0x648   : > { %v801_v58 = vmul.f32 %v993_v53, %v793_v55 }
 0x649   : > { %v800_v59 = vmul.f32 %v993_v53, %v792_v56 }
 0x64a   : > { %v809_v60 = vadd.f32 %v994_v57, %v801_v58 }
 0x64b   : > { %v808_v61 = vadd.f32 %v994_v57, %v800_v59 }
 0x64c   : > { %v811_v62 = vmax.f32 %v809_v60, 0.0 }
 0x64d   : > { %v810_v63 = vmax.f32 %v808_v61, 0.0 }
 0x64e   : > { %v813_v1 = vadd.f32 %v811_v62, %v669_v22 }
 0x64f   : > { %v812_v0 = vadd.f32 %v810_v63, %v668_v21 }
 0x651   : > { %1056 = vmatprep.mubr.msk.f32.mxu1 %vm484_vm1, %v812_v0 }
 0x652   : > { %1057 = vmatmul.mubr.msk.f32.vlgmr.msra.gmra.mrb[2].mxu1 %vm484_vm1, %v813_v1 }
 0x725   : > { %v1058_v3 = vpop.f32.mrb[2].mxu1 }
 0x726   : > { %v897_v4 = vpop.f32.mrb[3].mxu1  ;;  %v903_v6 = vadd.f32 %v1058_v3, %v995_v2 }
 0x727   : > { %v898_v5 = vadd.f32 %v995_v2, %v897_v4 }
 0x728   : > { %907 = vst [vmem:[%s388_s24 + $0x8] sm:$0xff] %v903_v6 }
 0x729   : > { %906 = vst [vmem:[%s388_s24] sm:$0xff] %v898_v5 }
 0x72a PF: > { %s21_s17 = sadd.s32 1, %s1109_s17  }
 0x72b   : > { %p18_p4 = scmp.ge.s32.totalorder %s21_s17, 4  }
 0x72d   :  { %20 = sbr.rel (!%p18_p4) target bundleno = 1 (0x1), region = 98 }

</bundles_post_ra>
